<compile_context>
chip_gen: v7x
topology: tpu7x:2x2x1
jax: 0.10.0
libtpu: 0.0.40
codegen_flags: <defaults>
</compile_context>

<pallas_src>
import functools

import jax
import jax.numpy as jnp
from jax.experimental import pallas as pl
from jax.experimental.pallas import tpu as pltpu

_EPS = 1e-5


@functools.lru_cache(maxsize=1)
def _vmem_budget_bytes():
    """~3/4 of physical VMEM (48 MiB on v7x, 96 MiB on v5e/v6e)."""
    try:
        cap = int(pltpu.get_tpu_info().vmem_capacity_bytes)
    except Exception:
        cap = 64 * 1024 * 1024          # conservative (v7x) fallback
    return max(32 * 1024 * 1024, (cap * 3) // 4)


def _target_tile_bytes():
    # ~4 MiB per pipelined buffer on v7x, ~8 MiB on v5e/v6e.
    return min(8 * 1024 * 1024, _vmem_budget_bytes() // 12)


def _round_up(x, m):
    return ((x + m - 1) // m) * m


def _lane_valid(shape, d_true, d_pad):
    if d_pad == d_true:
        return None
    return jax.lax.broadcasted_iota(jnp.int32, shape, len(shape) - 1) < d_true


def _layernorm_rows(x, *, d_true, lane_valid=None):
    """LayerNorm over the last dim, eps=1e-5, no affine (f32 in/out).

    If lane_valid is given (lane-padded feature dim), padded lanes are excluded
    from the statistics (divisor = true D) and zeroed in the output."""
    if lane_valid is None:
        mean = jnp.mean(x, axis=-1, keepdims=True)
        xc = x - mean
        var = jnp.mean(xc * xc, axis=-1, keepdims=True)
        return xc * jax.lax.rsqrt(var + _EPS)
    inv_d = jnp.float32(1.0 / d_true)
    x = jnp.where(lane_valid, x, 0.0)
    mean = jnp.sum(x, axis=-1, keepdims=True) * inv_d
    xc = jnp.where(lane_valid, x - mean, 0.0)
    var = jnp.sum(xc * xc, axis=-1, keepdims=True) * inv_d
    return xc * jax.lax.rsqrt(var + _EPS)


# --------------------------------------------------------------------------- #
# Fused fast path: x is read from HBM once; xn stays resident in the output
# VMEM buffer while the task index is computed, then it is masked in place.
# --------------------------------------------------------------------------- #
def _fused_kernel(x_ref, phi_ref, mu_ref, y_ref, t_ref, *,
                  batch, num_tasks, d_true, d_pad):
    x = x_ref[...].astype(jnp.float32)
    lv = _lane_valid(x.shape, d_true, d_pad)
    xn = _layernorm_rows(x, d_true=d_true, lane_valid=lv)
    y_ref[...] = xn                                  # stash xn (VMEM, not HBM)

    # Task selection: cosine similarity of the batch mean vs each prototype.
    xm = jnp.sum(xn, axis=0, keepdims=True) * jnp.float32(1.0 / batch)   # (1,Dp)
    mu = mu_ref[...].astype(jnp.float32)                                 # (T,Dp)
    dots = jnp.sum(mu * xm, axis=-1, keepdims=True)                      # (T,1)
    mu_nrm = jnp.sqrt(jnp.sum(mu * mu, axis=-1, keepdims=True))
    xm_nrm = jnp.sqrt(jnp.sum(xm * xm, axis=-1, keepdims=True))
    sims = dots / jnp.maximum(mu_nrm * xm_nrm, 1e-8)                     # (T,1)
    # argmax with first-occurrence tie-break (matches the strict `>` loop).
    max_sim = jnp.max(sims, axis=0, keepdims=True)
    idx = jax.lax.broadcasted_iota(jnp.int32, sims.shape, 0)
    cand = jnp.where(sims >= max_sim, idx, jnp.int32(2 ** 30))
    t_sel = jnp.min(cand, axis=0, keepdims=True)                         # (1,1)
    t_ref[...] = t_sel

    # Select phi[t] with a broadcasted masked sum (T tiny; no dynamic slice).
    phi = phi_ref[...].astype(jnp.float32)                               # (T,Dp)
    tid = jax.lax.broadcasted_iota(jnp.int32, (num_tasks, 1), 0)
    phi_t = jnp.sum(jnp.where(tid == t_sel, phi, 0.0), axis=0,
                    keepdims=True)                                       # (1,Dp)
    xn2 = y_ref[...]
    y_ref[...] = jnp.where(xn2 >= phi_t, xn2, jnp.float32(0.0))


# --------------------------------------------------------------------------- #
# Tiled path, pass 1: per-tile partial sums of LayerNorm(x).  Each tile writes
# its own (1, 1, Dp) row -> no resident accumulator -> fully "parallel"
# (megacore-shardable on v7x).  Combine + cosine sims + argmax run in XLA.
# --------------------------------------------------------------------------- #
def _partial_sums_kernel(x_ref, psum_ref, *, batch, block_b, d_true, d_pad):
    i = pl.program_id(0)
    x = x_ref[...].astype(jnp.float32)
    lv = _lane_valid(x.shape, d_true, d_pad)

    def _reduce(xv):
        xn = _layernorm_rows(xv, d_true=d_true, lane_valid=lv)
        psum_ref[...] = jnp.sum(xn, axis=0, keepdims=True)[None]        # (1,1,Dp)

    if batch % block_b != 0:
        # Only the last tile holds out-of-bounds garbage rows; gate the row
        # mask so full tiles skip the iota/compare/where entirely.
        is_last = i == pl.num_programs(0) - 1

        @pl.when(is_last)
        def _():
            row = jax.lax.broadcasted_iota(jnp.int32, (block_b, 1), 0) + i * block_b
            _reduce(jnp.where(row < batch, x, 0.0))     # zero rows -> LN -> 0

        @pl.when(jnp.logical_not(is_last))
        def _():
            _reduce(x)
    else:
        _reduce(x)


# --------------------------------------------------------------------------- #
# Tiled path, pass 2: recompute LayerNorm per tile and apply the phi[t] mask.
# Only row phi[t] is fetched (scalar-prefetch-driven BlockSpec index).
# NOTE: on a padded last tile the OOB garbage rows are normalized too, but the
# corresponding stores are clipped by Pallas, so they never reach HBM.
# --------------------------------------------------------------------------- #
def _mask_apply_kernel(t_sm_ref, x_ref, phi_ref, y_ref, *, d_true, d_pad):
    del t_sm_ref  # consumed only by the phi index_map (selects row phi[t])
    x = x_ref[...].astype(jnp.float32)
    lv = _lane_valid(x.shape, d_true, d_pad)
    xn = _layernorm_rows(x, d_true=d_true, lane_valid=lv)
    phi_t = phi_ref[0]                                                   # (1,Dp)
    y_ref[...] = jnp.where(xn >= phi_t, xn, jnp.float32(0.0)).astype(y_ref.dtype)


def _pick_block_b(batch, d_pad):
    """Rows per tile: ~target bytes per pipelined buffer; multiple of 8 rows
    whenever the batch is actually tiled (sublane alignment)."""
    rows = max(1, _target_tile_bytes() // (d_pad * 4))
    rows = min(rows, batch)
    if rows < batch:
        rows = max(8, (rows // 8) * 8)
    return int(rows)


@functools.partial(jax.jit, static_argnames=("block_b",))
def cosaxda_forward(x_nchw, phi, mu, block_b=None):
    batch = x_nchw.shape[0]
    num_tasks, d = phi.shape
    x2d = x_nchw.reshape(batch, d).astype(jnp.float32)
    phi_f = phi.astype(jnp.float32)
    mu_f = mu.astype(jnp.float32)

    # Lane-dense feature dim: pad D to a multiple of 128 so stores are full
    # vst's.  LN statistics use the true D; padded lanes are masked in-kernel.
    d_pad = _round_up(d, 128)
    if d_pad != d:
        x2d = jnp.pad(x2d, ((0, 0), (0, d_pad - d)))
        phi_f = jnp.pad(phi_f, ((0, 0), (0, d_pad - d)))
        mu_f = jnp.pad(mu_f, ((0, 0), (0, d_pad - d)))

    vmem_budget = _vmem_budget_bytes()

    # ----- fused fast path: everything resident in VMEM, 2 HBM passes --------
    # Estimate conservatively assumes double-buffered operands even at grid=(1,).
    fused_bytes = 2 * 4 * (2 * batch * d_pad + 2 * num_tasks * d_pad)
    if block_b is None and fused_bytes <= vmem_budget:
        y2d, t11 = pl.pallas_call(
            functools.partial(_fused_kernel, batch=batch, num_tasks=num_tasks,
                              d_true=d, d_pad=d_pad),
            out_shape=(jax.ShapeDtypeStruct((batch, d_pad), jnp.float32),
                       jax.ShapeDtypeStruct((1, 1), jnp.int32)),
            grid_spec=pltpu.PrefetchScalarGridSpec(
                num_scalar_prefetch=0,
                grid=(1,),
                in_specs=[
                    pl.BlockSpec((batch, d_pad), lambda i: (0, 0)),
                    pl.BlockSpec((num_tasks, d_pad), lambda i: (0, 0)),
                    pl.BlockSpec((num_tasks, d_pad), lambda i: (0, 0)),
                ],
                out_specs=[
                    pl.BlockSpec((batch, d_pad), lambda i: (0, 0)),
                    pl.BlockSpec((1, 1), lambda i: (0, 0)),
                ],
            ),
            compiler_params=pltpu.CompilerParams(
                dimension_semantics=("arbitrary",),
                vmem_limit_bytes=vmem_budget,
            ),
        )(x2d, phi_f, mu_f)
        t = t11[0, 0]
        y2d = y2d[:, :d] if d_pad != d else y2d
        return y2d.reshape(x_nchw.shape), t

    # ----- tiled path: 3 HBM passes (read x, read x again, write y) ----------
    if block_b is None:
        block_b = _pick_block_b(batch, d_pad)
    grid_b = pl.cdiv(batch, block_b)

    # VMEM sanity guard (pass 2 peak: double-buffered x + y tiles + a phi row).
    est = 4 * block_b * d_pad * 4 + 2 * d_pad * 4
    if est > vmem_budget:
        # TODO(synk): add a D-tiling grid axis for feature maps this large.
        raise ValueError(
            f"Tile of {block_b}x{d_pad} f32 does not fit the VMEM budget "
            f"({est} > {vmem_budget} bytes); reduce block_b or add D-tiling.")

    # Pass 1: per-tile partial sums of LayerNorm(x) (parallel grid).
    psums = pl.pallas_call(
        functools.partial(_partial_sums_kernel, batch=batch, block_b=block_b,
                          d_true=d, d_pad=d_pad),
        out_shape=jax.ShapeDtypeStruct((grid_b, 1, d_pad), jnp.float32),
        grid_spec=pltpu.PrefetchScalarGridSpec(
            num_scalar_prefetch=0,
            grid=(grid_b,),
            in_specs=[pl.BlockSpec((block_b, d_pad), lambda i: (i, 0))],
            out_specs=pl.BlockSpec((1, 1, d_pad), lambda i: (i, 0, 0)),
        ),
        compiler_params=pltpu.CompilerParams(
            dimension_semantics=("parallel",),
            vmem_limit_bytes=vmem_budget,
        ),
    )(x2d)

    # Tiny (grid_b + T)*Dp reduction + cosine sims + argmax in plain JAX.
    xm = jnp.sum(psums[:, 0, :], axis=0) * (1.0 / batch)                 # (Dp,)
    dots = mu_f @ xm                                                     # (T,)
    denom = jnp.maximum(jnp.linalg.norm(mu_f, axis=1) * jnp.linalg.norm(xm), 1e-8)
    sims = dots / denom
    t = jnp.argmax(sims).astype(jnp.int32)   # first max wins (== strict `>` loop)
    t_flat = t.reshape((1,))

    # Pass 2: elementwise mask/apply; only row phi[t] is fetched.
    phi3 = phi_f.reshape(num_tasks, 1, d_pad)
    y2d = pl.pallas_call(
        functools.partial(_mask_apply_kernel, d_true=d, d_pad=d_pad),
        out_shape=jax.ShapeDtypeStruct((batch, d_pad), jnp.float32),
        grid_spec=pltpu.PrefetchScalarGridSpec(
            num_scalar_prefetch=1,
            grid=(grid_b,),
            in_specs=[
                pl.BlockSpec((block_b, d_pad), lambda i, t_sm: (i, 0)),
                pl.BlockSpec((1, 1, d_pad), lambda i, t_sm: (t_sm[0], 0, 0)),
            ],
            out_specs=pl.BlockSpec((block_b, d_pad), lambda i, t_sm: (i, 0)),
        ),
        compiler_params=pltpu.CompilerParams(
            dimension_semantics=("parallel",),
            vmem_limit_bytes=vmem_budget,
        ),
    )(t_flat, x2d, phi3)

    y2d = y2d[:, :d] if d_pad != d else y2d
    return y2d.reshape(x_nchw.shape), t


def ref_forward(x_nchw, phi, mu):
    """Pure-JAX reference mirroring the PyTorch eval-mode forward."""
    b = x_nchw.shape[0]
    xf = x_nchw.reshape(b, -1).astype(jnp.float32)
    mean = xf.mean(-1, keepdims=True)
    var = ((xf - mean) ** 2).mean(-1, keepdims=True)
    xn = (xf - mean) / jnp.sqrt(var + _EPS)
    xm = xn.mean(0)
    sims = (mu @ xm) / jnp.maximum(
        jnp.linalg.norm(mu, axis=1) * jnp.linalg.norm(xm), 1e-8
    )
    t = jnp.argmax(sims)  # first max wins, same as strict-> loop
    phi_t = phi[t]
    y = xn * (xn >= phi_t).astype(xn.dtype)
    return y.reshape(x_nchw.shape), t


def _check(x, phi, mu, block_b=None):
    y, t = cosaxda_forward(x, phi, mu, block_b=block_b)
    jax.block_until_ready(y)
    y_ref, t_ref = ref_forward(x, phi, mu)
    assert int(t) == int(t_ref), f"task mismatch: {int(t)} vs {int(t_ref)}"
    assert jnp.allclose(y, y_ref, atol=1e-5, rtol=1e-5), "output mismatch"


if __name__ == "__main__":
    key = jax.random.PRNGKey(0)
    k1, k2, k3, k4, k5, k6, k7 = jax.random.split(key, 7)

    # Case 1: small shape consistent with the module -> fused single-call path.
    B, T, C, H, W = 2, 2, 4, 16, 16
    D = C * H * W
    x = jax.random.normal(k1, (B, C, H, W), dtype=jnp.float32)
    phi = 0.1 * jax.random.normal(k2, (T, D), dtype=jnp.float32)   # thresholds
    mu = 0.1 * jax.random.normal(k3, (T, D), dtype=jnp.float32)    # prototypes
    _check(x, phi, mu)

    # Case 2: tiled path with a partial (masked) last tile.
    B2 = 20
    x2 = jax.random.normal(k4, (B2, C, H, W), dtype=jnp.float32)
    _check(x2, phi, mu, block_b=8)   # grid of 3 tiles, last tile masked

    # Case 3: D not a multiple of 128 -> lane-padded path (fused and tiled).
    C3, H3, W3 = 3, 10, 10           # D = 300 -> padded to 384 lanes
    D3 = C3 * H3 * W3
    x3 = jax.random.normal(k5, (4, C3, H3, W3), dtype=jnp.float32)
    phi3 = 0.1 * jax.random.normal(k6, (3, D3), dtype=jnp.float32)
    mu3 = 0.1 * jax.random.normal(k7, (3, D3), dtype=jnp.float32)
    _check(x3, phi3, mu3)                         # fused, padded lanes
    x4 = jax.random.normal(k5, (20, C3, H3, W3), dtype=jnp.float32)
    _check(x4, phi3, mu3, block_b=8)              # tiled, padded lanes + rows

    print("KERNEL_OK")
</pallas_src>

<mosaic_0001>
module attributes {stable_mosaic.version = 11 : i64} {
  func.func @_fused_kernel(%arg0: i32, %arg1: memref<2x1024xf32, #tpu.memory_space<vmem>>, %arg2: memref<2x1024xf32, #tpu.memory_space<vmem>>, %arg3: memref<2x1024xf32, #tpu.memory_space<vmem>>, %arg4: memref<2x1024xf32, #tpu.memory_space<vmem>>, %arg5: memref<1x1xi32, #tpu.memory_space<vmem>>) attributes {dimension_semantics = [#tpu.dimension_semantics<arbitrary>], iteration_bounds = array<i64: 1>, scalar_prefetch = 0 : i64, scratch_operands = 0 : i64, tpu.core_type = #tpu.core_type<tc>, window_params = [{pipeline_mode = #tpu.pipeline_mode<synchronous>, transform_indices = @transform_0, window_bounds = array<i64: 2, 1024>}, {pipeline_mode = #tpu.pipeline_mode<synchronous>, transform_indices = @transform_1, window_bounds = array<i64: 2, 1024>}, {pipeline_mode = #tpu.pipeline_mode<synchronous>, transform_indices = @transform_2, window_bounds = array<i64: 2, 1024>}, {pipeline_mode = #tpu.pipeline_mode<synchronous>, transform_indices = @transform_3, window_bounds = array<i64: 2, 1024>}, {pipeline_mode = #tpu.pipeline_mode<synchronous>, transform_indices = @transform_4, window_bounds = array<i64: 1, 1>}]} {
    %c0 = arith.constant 0 : index
    %c0_0 = arith.constant 0 : index
    %0 = vector.load %arg1[%c0, %c0_0] : memref<2x1024xf32, #tpu.memory_space<vmem>>, vector<2x1024xf32>
    %cst = arith.constant dense<0.000000e+00> : vector<2xf32>
    %1 = vector.multi_reduction <add>, %0, %cst [1] : vector<2x1024xf32> to vector<2xf32>
    %2 = vector.shape_cast %1 : vector<2xf32> to vector<2x1xf32>
    %cst_1 = arith.constant 1.024000e+03 : f32
    %3 = vector.broadcast %cst_1 : f32 to vector<2x1xf32>
    %4 = arith.divf %2, %3 : vector<2x1xf32>
    %5 = vector.broadcast %4 : vector<2x1xf32> to vector<2x1024xf32>
    %6 = arith.subf %0, %5 : vector<2x1024xf32>
    %7 = arith.mulf %6, %6 : vector<2x1024xf32>
    %cst_2 = arith.constant dense<0.000000e+00> : vector<2xf32>
    %8 = vector.multi_reduction <add>, %7, %cst_2 [1] : vector<2x1024xf32> to vector<2xf32>
    %9 = vector.shape_cast %8 : vector<2xf32> to vector<2x1xf32>
    %cst_3 = arith.constant 1.024000e+03 : f32
    %10 = vector.broadcast %cst_3 : f32 to vector<2x1xf32>
    %11 = arith.divf %9, %10 : vector<2x1xf32>
    %cst_4 = arith.constant 9.99999974E-6 : f32
    %12 = vector.broadcast %cst_4 : f32 to vector<2x1xf32>
    %13 = arith.addf %11, %12 : vector<2x1xf32>
    %14 = math.rsqrt %13 : vector<2x1xf32>
    %15 = vector.broadcast %14 : vector<2x1xf32> to vector<2x1024xf32>
    %16 = arith.mulf %6, %15 : vector<2x1024xf32>
    %c0_5 = arith.constant 0 : index
    %c0_6 = arith.constant 0 : index
    %17 = vector.load %arg4[%c0_5, %c0_6] : memref<2x1024xf32, #tpu.memory_space<vmem>>, vector<2x1024xf32>
    tpu.vector_store %arg4[%c0_5, %c0_6], %16 {strides = array<i32>} : memref<2x1024xf32, #tpu.memory_space<vmem>>, vector<2x1024xf32>,
    %cst_7 = arith.constant dense<0.000000e+00> : vector<1024xf32>
    %18 = vector.multi_reduction <add>, %16, %cst_7 [0] : vector<2x1024xf32> to vector<1024xf32>
    %19 = vector.shape_cast %18 : vector<1024xf32> to vector<1x1024xf32>
    %cst_8 = arith.constant 5.000000e-01 : f32
    %20 = vector.broadcast %cst_8 : f32 to vector<1x1024xf32>
    %21 = arith.mulf %19, %20 : vector<1x1024xf32>
    %c0_9 = arith.constant 0 : index
    %c0_10 = arith.constant 0 : index
    %22 = vector.load %arg3[%c0_9, %c0_10] : memref<2x1024xf32, #tpu.memory_space<vmem>>, vector<2x1024xf32>
    %23 = vector.broadcast %21 : vector<1x1024xf32> to vector<2x1024xf32>
    %24 = arith.mulf %22, %23 : vector<2x1024xf32>
    %cst_11 = arith.constant dense<0.000000e+00> : vector<2xf32>
    %25 = vector.multi_reduction <add>, %24, %cst_11 [1] : vector<2x1024xf32> to vector<2xf32>
    %26 = vector.shape_cast %25 : vector<2xf32> to vector<2x1xf32>
    %27 = arith.mulf %22, %22 : vector<2x1024xf32>
    %cst_12 = arith.constant dense<0.000000e+00> : vector<2xf32>
    %28 = vector.multi_reduction <add>, %27, %cst_12 [1] : vector<2x1024xf32> to vector<2xf32>
    %29 = vector.shape_cast %28 : vector<2xf32> to vector<2x1xf32>
    %30 = math.sqrt %29 : vector<2x1xf32>
    %31 = arith.mulf %21, %21 : vector<1x1024xf32>
    %cst_13 = arith.constant dense<0.000000e+00> : vector<1xf32>
    %32 = vector.multi_reduction <add>, %31, %cst_13 [1] : vector<1x1024xf32> to vector<1xf32>
    %33 = vector.shape_cast %32 : vector<1xf32> to vector<1x1xf32>
    %34 = math.sqrt %33 : vector<1x1xf32>
    %35 = vector.broadcast %34 : vector<1x1xf32> to vector<2x1xf32>
    %36 = arith.mulf %30, %35 : vector<2x1xf32>
    %cst_14 = arith.constant 9.99999993E-9 : f32
    %37 = vector.broadcast %cst_14 : f32 to vector<2x1xf32>
    %38 = arith.maximumf %36, %37 : vector<2x1xf32>
    %39 = arith.divf %26, %38 : vector<2x1xf32>
    %cst_15 = arith.constant dense<0xFF800000> : vector<1xf32>
    %40 = vector.multi_reduction <maximumf>, %39, %cst_15 [0] : vector<2x1xf32> to vector<1xf32>
    %41 = vector.shape_cast %40 : vector<1xf32> to vector<1x1xf32>
    %42 = tpu.iota {dimensions = array<i32: 0>} : vector<2x1xi32>
    %43 = vector.broadcast %41 : vector<1x1xf32> to vector<2x1xf32>
    %44 = arith.cmpf oge, %39, %43 : vector<2x1xf32>
    %c1073741824_i32 = arith.constant 1073741824 : i32
    %45 = vector.broadcast %c1073741824_i32 : i32 to vector<2x1xi32>
    %46 = arith.select %44, %42, %45 : vector<2x1xi1>, vector<2x1xi32>
    %cst_16 = arith.constant dense<2147483647> : vector<1xi32>
    %47 = vector.multi_reduction <minsi>, %46, %cst_16 [0] : vector<2x1xi32> to vector<1xi32>
    %48 = vector.shape_cast %47 : vector<1xi32> to vector<1x1xi32>
    %c0_17 = arith.constant 0 : index
    %c0_18 = arith.constant 0 : index
    %49 = vector.load %arg5[%c0_17, %c0_18] : memref<1x1xi32, #tpu.memory_space<vmem>>, vector<1x1xi32>
    tpu.vector_store %arg5[%c0_17, %c0_18], %48 {strides = array<i32>} : memref<1x1xi32, #tpu.memory_space<vmem>>, vector<1x1xi32>,
    %c0_19 = arith.constant 0 : index
    %c0_20 = arith.constant 0 : index
    %50 = vector.load %arg2[%c0_19, %c0_20] : memref<2x1024xf32, #tpu.memory_space<vmem>>, vector<2x1024xf32>
    %51 = tpu.iota {dimensions = array<i32: 0>} : vector<2x1xi32>
    %52 = vector.broadcast %48 : vector<1x1xi32> to vector<2x1xi32>
    %53 = arith.cmpi eq, %51, %52 : vector<2x1xi32>
    %cst_21 = arith.constant 0.000000e+00 : f32
    %54 = vector.shape_cast %53 : vector<2x1xi1> to vector<2x1xi1>
    %55 = vector.broadcast %54 : vector<2x1xi1> to vector<2x1024xi1>
    %56 = vector.broadcast %cst_21 : f32 to vector<2x1024xf32>
    %57 = arith.select %55, %50, %56 : vector<2x1024xi1>, vector<2x1024xf32>
    %cst_22 = arith.constant dense<0.000000e+00> : vector<1024xf32>
    %58 = vector.multi_reduction <add>, %57, %cst_22 [0] : vector<2x1024xf32> to vector<1024xf32>
    %59 = vector.shape_cast %58 : vector<1024xf32> to vector<1x1024xf32>
    %c0_23 = arith.constant 0 : index
    %c0_24 = arith.constant 0 : index
    %60 = vector.load %arg4[%c0_23, %c0_24] : memref<2x1024xf32, #tpu.memory_space<vmem>>, vector<2x1024xf32>
    %61 = vector.broadcast %59 : vector<1x1024xf32> to vector<2x1024xf32>
    %62 = arith.cmpf oge, %60, %61 : vector<2x1024xf32>
    %cst_25 = arith.constant 0.000000e+00 : f32
    %63 = vector.broadcast %cst_25 : f32 to vector<2x1024xf32>
    %64 = arith.select %62, %60, %63 : vector<2x1024xi1>, vector<2x1024xf32>
    %c0_26 = arith.constant 0 : index
    %c0_27 = arith.constant 0 : index
    %65 = vector.load %arg4[%c0_26, %c0_27] : memref<2x1024xf32, #tpu.memory_space<vmem>>, vector<2x1024xf32>
    tpu.vector_store %arg4[%c0_26, %c0_27], %64 {strides = array<i32>} : memref<2x1024xf32, #tpu.memory_space<vmem>>, vector<2x1024xf32>,
    return
  }
  func.func @transform_0(%arg0: i32) -> (i32, i32) {
    %c0_i32 = arith.constant 0 : i32
    %c0_i32_0 = arith.constant 0 : i32
    %c0_i32_1 = arith.constant 0 : i32
    return %c0_i32, %c0_i32_0 : i32, i32
  }
  func.func @transform_1(%arg0: i32) -> (i32, i32) {
    %c0_i32 = arith.constant 0 : i32
    %c0_i32_0 = arith.constant 0 : i32
    %c0_i32_1 = arith.constant 0 : i32
    return %c0_i32, %c0_i32_0 : i32, i32
  }
  func.func @transform_2(%arg0: i32) -> (i32, i32) {
    %c0_i32 = arith.constant 0 : i32
    %c0_i32_0 = arith.constant 0 : i32
    %c0_i32_1 = arith.constant 0 : i32
    return %c0_i32, %c0_i32_0 : i32, i32
  }
  func.func @transform_3(%arg0: i32) -> (i32, i32) {
    %c0_i32 = arith.constant 0 : i32
    %c0_i32_0 = arith.constant 0 : i32
    %c0_i32_1 = arith.constant 0 : i32
    return %c0_i32, %c0_i32_0 : i32, i32
  }
  func.func @transform_4(%arg0: i32) -> (i32, i32) {
    %c0_i32 = arith.constant 0 : i32
    %c0_i32_0 = arith.constant 0 : i32
    %c0_i32_1 = arith.constant 0 : i32
    return %c0_i32, %c0_i32_0 : i32, i32
  }
}

</mosaic_0001>

<bundles_post_ra>
// kernel: cosaxda_forward.1
= control target key start
LH: loop header
LB: loop body
LE: loop exit
PB: predicated region body
PF: predicated region fallthrough
CT: control target
= control target key end

     0   :  { %v25_v0 = vlaneseq  ;;  %v733_v1 = vmov 1983009808   ;;  %s945_s0 = inlined_call_operand.vmem [shape: f32[2,1024], index: 0, kind: input, shape index: {}]   ;;  %s946_s1 = inlined_call_operand.vmem [shape: f32[2,1024], index: 1, kind: input, shape index: {}]   ;;  %s947_s2 = inlined_call_operand.vmem [shape: f32[2,1024], index: 2, kind: input, shape index: {}]   ;;  %s948_s3 = inlined_call_operand.vmem [shape: f32[2,1024], index: 3, kind: output, shape index: {0}]   ;;  %s949_s4 = inlined_call_operand.hbm [shape: s32[1,1], index: 4, kind: output, shape index: {1}]  }
   0x1   :  { %v23_v2 = vunpack.c.l.s4 %v733_v1 }
   0x2   :  { %10 = vsyncpa [#allocation3], 0  ;;  %v17_v3 = vld [vmem:[%s945_s0] sm:$0xff]  ;;  %v764_v4 = vshrl.u32 %v25_v0, 7  ;;  %v18_v8 = vld [vmem:[%s945_s0 + $0x8] sm:$0xff]  ;;  %vm63_vm0 = vcmask 1041408  }
   0x3   :  { %v21_v5 = vcombine.high %v17_v3, %v17_v3  ;;  %v24_v6 = vunpack.c.0.s8 %v23_v2  ;;  %v38_v13 = vcombine.high %v18_v8, %v18_v8  ;;  %v734_v33 = vmov 269488144   ;;  %s735_s25 = smov [#allocation2]  }
   0x4   :  { %v85_v34 = vunpack.c.l.s4 %v734_v33  ;;  %s684_s26 = sshll.u32 %s735_s25, 4  ;;  %vm509_vm8 = vcmask 0   ;;  %s685_s26 = int_to_ptr.vmem [resolvable:$true] %s684_s26 }
   0x5   :  { %v767_v7 = vsub.s32 %v24_v6, %v764_v4  ;;  %v811_v6 = vld [vmem:[%s947_s2] sm:$0xff]  ;;  %s713_s27 = scalar_lea.vmem %s685_s26, 32  ;;  %p714_p1 = scmp.lt.s32.totalorder %s685_s26, %s685_s26 }
   0x6   :  { %v86_v35 = vunpack.c.0.s8 %v85_v34 }
   0x7   :  { %v28_v9 = vrot.slane %v17_v3, %v767_v7  ;;  %v35_v10 = vrot.slane %v21_v5, %v767_v7  ;;  %v45_v14 = vrot.slane %v18_v8, %v767_v7  ;;  %v52_v19 = vrot.slane %v38_v13, %v767_v7 }
   0x8   :  { %v785_v36 = vsub.s32 %v86_v35, %v764_v4 }
   0x9   :  { %v36_v11 = vcombine.high %v28_v9, %v28_v9  ;;  %v37_v12 = vcombine.high %v35_v10, %v35_v10  ;;  %v64_v15 = vsel %vm63_vm0, %v28_v9, 0.0  ;;  %v67_v17 = vsel %vm63_vm0, %v35_v10, 0.0 }
   0xa   :  { %v53_v20 = vcombine.high %v45_v14, %v45_v14  ;;  %v71_v23 = vsel %vm63_vm0, %v45_v14, 0.0  ;;  %v54_v25 = vcombine.high %v52_v19, %v52_v19  ;;  %v75_v28 = vsel %vm63_vm0, %v52_v19, 0.0 }
   0xb   :  { %v65_v16 = vsel %vm63_vm0, %v36_v11, 0.0  ;;  %v69_v21 = vsel %vm63_vm0, %v37_v12, 0.0  ;;  %v819_v12 = vld [vmem:[%s947_s2 + $0x8] sm:$0xff] }
   0xc   :  { %v66_v18 = vadd.f32 %v65_v16, %v64_v15  ;;  %v73_v26 = vsel %vm63_vm0, %v53_v20, 0.0  ;;  %v77_v30 = vsel %vm63_vm0, %v54_v25, 0.0  ;;  %v391_v14 = vmul.f32 %v819_v12, %v819_v12 }
   0xe   :  { %v68_v22 = vadd.f32 %v67_v17, %v66_v18  ;;  %v411_v19 = vcombine.high %v391_v14, %v391_v14  ;;  %v418_v20 = vrot.slane %v391_v14, %v767_v7 }
  0x10   :  { %v70_v24 = vadd.f32 %v69_v21, %v68_v22 }
  0x12   :  { %v72_v27 = vadd.f32 %v71_v23, %v70_v24  ;;  %v425_v23 = vrot.slane %v411_v19, %v767_v7  ;;  %v426_v24 = vcombine.high %v418_v20, %v418_v20 }
  0x14   :  { %v74_v29 = vadd.f32 %v73_v26, %v72_v27  ;;  %v443_v26 = vsel %vm63_vm0, %v418_v20, 0.0 }
  0x16   :  { %v76_v31 = vadd.f32 %v75_v28, %v74_v29  ;;  %v427_v28 = vcombine.high %v425_v23, %v425_v23  ;;  %v445_v29 = vsel %vm63_vm0, %v426_v24, 0.0 }
  0x18   :  { %v78_v32 = vadd.f32 %v77_v30, %v76_v31  ;;  %v447_v31 = vsel %vm63_vm0, %v425_v23, 0.0  ;;  %v449_v33 = vsel %vm63_vm0, %v427_v28, 0.0 }
  0x1a   :  { %79 = vadd.xlane.f32.xlu0 %v78_v32 }
  0xa7   :  { %v80_v37 = vpop.xlane.xlu0 %79 }
  0xa8   :  { %v82_v38 = vmul.f32 0.0009765625, %v80_v37 }
  0xaa   :  { %v90_v39 = vrot.slane %v82_v38, %v785_v36 }
  0xac   :  { %v788_v40 = vsub.f32 %v17_v3, %v90_v39  ;;  %v790_v41 = vsub.f32 %v18_v8, %v90_v39  ;;  %v390_v8 = vmul.f32 %v811_v6, %v811_v6 }
  0xae   :  { %v94_v42 = vmul.f32 %v788_v40, %v788_v40  ;;  %v95_v43 = vmul.f32 %v790_v41, %v790_v41  ;;  %v401_v9 = vrot.slane %v390_v8, %v767_v7  ;;  %v394_v10 = vcombine.high %v390_v8, %v390_v8 }
  0xb0   :  { %v98_v44 = vcombine.high %v94_v42, %v94_v42  ;;  %v105_v45 = vrot.slane %v94_v42, %v767_v7  ;;  %v122_v48 = vrot.slane %v95_v43, %v767_v7  ;;  %v115_v52 = vcombine.high %v95_v43, %v95_v43 }
  0xb1   :  { %v409_v11 = vcombine.high %v401_v9, %v401_v9  ;;  %v436_v13 = vsel %vm63_vm0, %v401_v9, 0.0  ;;  %v408_v15 = vrot.slane %v394_v10, %v767_v7 }
  0xb2   :  { %v112_v46 = vrot.slane %v98_v44, %v767_v7  ;;  %v113_v47 = vcombine.high %v105_v45, %v105_v45  ;;  %v140_v49 = vsel %vm63_vm0, %v105_v45, 0.0  ;;  %v129_v56 = vrot.slane %v115_v52, %v767_v7 }
  0xb3   :  { %v130_v57 = vcombine.high %v122_v48, %v122_v48  ;;  %v147_v60 = vsel %vm63_vm0, %v122_v48, 0.0  ;;  %v437_v16 = vsel %vm63_vm0, %v409_v11, 0.0  ;;  %v410_v18 = vcombine.high %v408_v15, %v408_v15 }
  0xb4   :  { %v141_v50 = vsel %vm63_vm0, %v113_v47, 0.0  ;;  %v114_v51 = vcombine.high %v112_v46, %v112_v46  ;;  %v143_v54 = vsel %vm63_vm0, %v112_v46, 0.0  ;;  %v131_v62 = vcombine.high %v129_v56, %v129_v56 }
  0xb5   :  { %v142_v53 = vadd.f32 %v141_v50, %v140_v49  ;;  %v149_v63 = vsel %vm63_vm0, %v130_v57, 0.0  ;;  %v151_v1 = vsel %vm63_vm0, %v129_v56, 0.0  ;;  %v438_v17 = vadd.f32 %v437_v16, %v436_v13 }
  0xb6   :  { %v145_v58 = vsel %vm63_vm0, %v114_v51, 0.0  ;;  %v153_v3 = vsel %vm63_vm0, %v131_v62, 0.0  ;;  %v439_v21 = vsel %vm63_vm0, %v408_v15, 0.0  ;;  %v441_v25 = vsel %vm63_vm0, %v410_v18, 0.0 }
  0xb7   :  { %v144_v55 = vadd.f32 %v143_v54, %v142_v53  ;;  %v440_v22 = vadd.f32 %v439_v21, %v438_v17 }
  0xb9   :  { %v146_v59 = vadd.f32 %v145_v58, %v144_v55  ;;  %v442_v27 = vadd.f32 %v441_v25, %v440_v22 }
  0xbb   :  { %v148_v61 = vadd.f32 %v147_v60, %v146_v59  ;;  %v444_v30 = vadd.f32 %v443_v26, %v442_v27 }
  0xbd   :  { %v150_v0 = vadd.f32 %v149_v63, %v148_v61  ;;  %v446_v32 = vadd.f32 %v445_v29, %v444_v30 }
  0xbf   :  { %v152_v2 = vadd.f32 %v151_v1, %v150_v0  ;;  %v448_v34 = vadd.f32 %v447_v31, %v446_v32 }
  0xc1   :  { %v154_v5 = vadd.f32 %v153_v3, %v152_v2  ;;  %v450_v35 = vadd.f32 %v449_v33, %v448_v34 }
  0xc3   :  { %155 = vadd.xlane.f32.xlu0 %v154_v5  ;;  %451 = vadd.xlane.f32.xlu1 %v450_v35 }
 0x150   :  { %v156_v37 = vpop.xlane.xlu0 %155 }
 0x151   :  { %v157_v38 = vmul.f32 0.0009765625, %v156_v37 }
 0x153   :  { %v158_v39 = vadd.f32 1e-05, %v157_v38 }
 0x155   :  { %701 = vrsqrt.f32 %v158_v39 }
 0x15f   :  { %v702_v42 = vpop.eup %701 }
 0x160   :  { %v167_v43 = vrot.slane %v702_v42, %v785_v36 }
 0x162   :  { %v836_v44 = vmul.f32 %v167_v43, %v788_v40  ;;  %v839_v45 = vmul.f32 %v167_v43, %v790_v41 }
 0x164   :  { %v175_v46 = vcombine.high %v836_v44, %v836_v44  ;;  %v182_v47 = vrot.slane %v836_v44, %v767_v7  ;;  %v192_v48 = vcombine.high %v839_v45, %v839_v45  ;;  %v199_v49 = vrot.slane %v839_v45, %v767_v7 }
 0x166   :  { %v189_v36 = vrot.slane %v175_v46, %v767_v7  ;;  %v190_v50 = vcombine.high %v182_v47, %v182_v47  ;;  %v217_v40 = vsel %vm63_vm0, %v182_v47, 0.0  ;;  %v206_v41 = vrot.slane %v192_v48, %v767_v7 }
 0x167   :  { %v218_v51 = vrot.slane %v217_v40, 4  ;;  %v207_v52 = vcombine.high %v199_v49, %v199_v49  ;;  %v245_v53 = vsel %vm63_vm0, %v199_v49, 0.0 }
 0x168   :  { %v191_v54 = vcombine.high %v189_v36, %v189_v36  ;;  %v208_v55 = vcombine.high %v206_v41, %v206_v41  ;;  %v224_v56 = vsel %vm63_vm0, %v190_v50, 0.0  ;;  %v231_v57 = vsel %vm63_vm0, %v189_v36, 0.0 }
 0x169   :  { %v219_v58 = vadd.f32 %v218_v51, %v217_v40  ;;  %v225_v59 = vrot.slane %v224_v56, 4  ;;  %v232_v60 = vrot.slane %v231_v57, 4  ;;  %v246_v61 = vrot.slane %v245_v53, 4 }
 0x16a   :  { %v238_v62 = vsel %vm63_vm0, %v191_v54, 0.0  ;;  %v252_v63 = vsel %vm63_vm0, %v207_v52, 0.0  ;;  %v259_v0 = vsel %vm63_vm0, %v206_v41, 0.0  ;;  %v266_v1 = vsel %vm63_vm0, %v208_v55, 0.0 }
 0x16b   :  { %v220_v2 = vrot.slane %v219_v58, 2  ;;  %v226_v3 = vadd.f32 %v225_v59, %v224_v56  ;;  %v233_v5 = vadd.f32 %v232_v60, %v231_v57  ;;  %v239_v8 = vrot.slane %v238_v62, 4 }
 0x16c   :  { %v247_v9 = vadd.f32 %v246_v61, %v245_v53  ;;  %v253_v10 = vrot.slane %v252_v63, 4  ;;  %v260_v11 = vrot.slane %v259_v0, 4  ;;  %v267_v13 = vrot.slane %v266_v1, 4 }
 0x16d   :  { %v221_v14 = vadd.f32 %v220_v2, %v219_v58  ;;  %v227_v15 = vrot.slane %v226_v3, 2  ;;  %v234_v16 = vrot.slane %v233_v5, 2  ;;  %v240_v17 = vadd.f32 %v239_v8, %v238_v62 }
 0x16e   :  { %v248_v18 = vrot.slane %v247_v9, 2  ;;  %v254_v19 = vadd.f32 %v253_v10, %v252_v63  ;;  %v261_v20 = vadd.f32 %v260_v11, %v259_v0  ;;  %v268_v21 = vadd.f32 %v267_v13, %v266_v1 }
 0x16f   :  { %v222_v22 = vrot.slane %v221_v14, 1  ;;  %v228_v23 = vadd.f32 %v227_v15, %v226_v3  ;;  %v235_v24 = vadd.f32 %v234_v16, %v233_v5  ;;  %v241_v25 = vrot.slane %v240_v17, 2 }
 0x170   :  { %v249_v26 = vadd.f32 %v248_v18, %v247_v9  ;;  %v255_v27 = vrot.slane %v254_v19, 2  ;;  %v262_v28 = vrot.slane %v261_v20, 2  ;;  %v269_v29 = vrot.slane %v268_v21, 2 }
 0x171   :  { %v223_v30 = vadd.f32 %v222_v22, %v221_v14  ;;  %v229_v31 = vrot.slane %v228_v23, 1  ;;  %v236_v32 = vrot.slane %v235_v24, 1  ;;  %v242_v33 = vadd.f32 %v241_v25, %v240_v17 }
 0x172   :  { %v250_v34 = vrot.slane %v249_v26, 1  ;;  %v256_v35 = vadd.f32 %v255_v27, %v254_v19  ;;  %v263_v37 = vadd.f32 %v262_v28, %v261_v20  ;;  %v270_v38 = vadd.f32 %v269_v29, %v268_v21 }
 0x173   :  { %v230_v39 = vadd.f32 %v229_v31, %v228_v23  ;;  %v237_v42 = vadd.f32 %v236_v32, %v235_v24  ;;  %v243_v43 = vrot.slane %v242_v33, 1  ;;  %v273_v46 = vmul.f32 0.5, %v223_v30 }
 0x174   :  { %v251_v47 = vadd.f32 %v250_v34, %v249_v26  ;;  %v257_v48 = vrot.slane %v256_v35, 1  ;;  %v264_v49 = vrot.slane %v263_v37, 1  ;;  %v271_v36 = vrot.slane %v270_v38, 1 }
 0x175   :  { %v244_v50 = vadd.f32 %v243_v43, %v242_v33  ;;  %v274_v40 = vmul.f32 0.5, %v230_v39  ;;  %v275_v41 = vmul.f32 0.5, %v237_v42  ;;  %v460_v56 = vmul.f32 %v273_v46, %v273_v46 }
 0x176   :  { %v258_v51 = vadd.f32 %v257_v48, %v256_v35  ;;  %v265_v52 = vadd.f32 %v264_v49, %v263_v37  ;;  %v272_v53 = vadd.f32 %v271_v36, %v270_v38  ;;  %v277_v58 = vmul.f32 0.5, %v251_v47 }
 0x177   :  { %v276_v54 = vmul.f32 0.5, %v244_v50  ;;  %v291_v55 = vcombine.low %v273_v46, %v274_v40  ;;  %v461_v57 = vmul.f32 %v274_v40, %v274_v40  ;;  %v462_v62 = vmul.f32 %v275_v41, %v275_v41 }
 0x178   :  { %v278_v59 = vmul.f32 0.5, %v258_v51  ;;  %v279_v60 = vmul.f32 0.5, %v265_v52  ;;  %v280_v61 = vmul.f32 0.5, %v272_v53  ;;  %v464_v13 = vmul.f32 %v277_v58, %v277_v58  ;;  %v452_v51 = vpop.xlane.xlu1 %451 }
 0x179   :  { %v468_v63 = vadd.f32 %v461_v57, %v460_v56  ;;  %v292_v0 = vcombine.low %v275_v41, %v276_v54  ;;  %v299_v3 = vrot.slane %v291_v55, %v767_v7  ;;  %v463_v5 = vmul.f32 %v276_v54, %v276_v54 }
 0x17a   :  { %v308_v1 = vcombine.low %v277_v58, %v278_v59  ;;  %v309_v2 = vcombine.low %v279_v60, %v280_v61  ;;  %v465_v17 = vmul.f32 %v278_v59, %v278_v59  ;;  %v466_v21 = vmul.f32 %v279_v60, %v279_v60 }
 0x17b   :  { %v469_v8 = vadd.f32 %v468_v63, %v462_v62  ;;  %v306_v9 = vrot.slane %v292_v0, %v767_v7  ;;  %v467_v25 = vmul.f32 %v280_v61, %v280_v61  ;;  %703 = vrsqrt.f32 %v452_v51 }
 0x17c   :  { %v316_v10 = vrot.slane %v308_v1, %v767_v7  ;;  %v323_v11 = vrot.slane %v309_v2, %v767_v7  ;;  %vm455_vm1 = vcmp.eq.f32.partialorder %v452_v51, inf  ;;  %v458_v56 = vand.u32 2147483648, %v452_v51 }
 0x17d   :  { %v470_v14 = vadd.f32 %v469_v8, %v463_v5  ;;  %v307_v15 = vcombine.low %v299_v3, %v306_v9  ;;  %vm457_vm2 = vcmp.eq.f32.partialorder %v452_v51, 0.0 }
 0x17e   :  { %v324_v16 = vcombine.low %v316_v10, %v323_v11 }
 0x17f   :  { %v471_v18 = vadd.f32 %v470_v14, %v464_v13  ;;  %v327_v19 = vmul.f32 %v307_v15, %v811_v6 }
 0x180   :  { %v328_v20 = vmul.f32 %v324_v16, %v819_v12  ;;  %v511_v16 = vld [vmem:[%s946_s1] sm:$0xff] }
 0x181   :  { %v472_v22 = vadd.f32 %v471_v18, %v465_v17  ;;  %v331_v23 = vcombine.high %v327_v19, %v327_v19  ;;  %v338_v24 = vrot.slane %v327_v19, %v767_v7  ;;  %v512_v18 = vld [vmem:[%s946_s1 + $0x8] sm:$0xff]  ;;  %s709_s1 = scalar_lea.vmem %s685_s26, 16 }
 0x182   :  { %v348_v29 = vcombine.high %v328_v20, %v328_v20  ;;  %v355_v30 = vrot.slane %v328_v20, %v767_v7  ;;  %v518_v20 = vcombine.high %v511_v16, %v511_v16  ;;  %p710_p0 = scmp.ne.s32.totalorder %s685_s26, %s709_s1  ;;  %p715_p2 = scmp.lt.s32.totalorder %s713_s27, %s709_s1 }
 0x183   :  { %v473_v26 = vadd.f32 %v472_v22, %v466_v21  ;;  %v345_v27 = vrot.slane %v331_v23, %v767_v7  ;;  %v346_v28 = vcombine.high %v338_v24, %v338_v24  ;;  %v373_v33 = vsel %vm63_vm0, %v338_v24, 0.0 }
 0x184   :  { %v362_v37 = vrot.slane %v348_v29, %v767_v7  ;;  %v363_v38 = vcombine.high %v355_v30, %v355_v30  ;;  %v380_v43 = vsel %vm63_vm0, %v355_v30, 0.0  ;;  %v535_v21 = vcombine.high %v512_v18, %v512_v18  ;;  %p716_p3 = por %p715_p2, %p714_p1 }
 0x185   :  { %v474_v31 = vadd.f32 %v473_v26, %v467_v25  ;;  %v347_v32 = vcombine.high %v345_v27, %v345_v27  ;;  %v374_v6 = vsel %vm63_vm0, %v346_v28, 0.0  ;;  %v376_v34 = vsel %vm63_vm0, %v345_v27, 0.0  ;;  %v704_v53 = vpop.eup %703 }
 0x186   :  { %v375_v12 = vadd.f32 %v374_v6, %v373_v33  ;;  %v364_v47 = vcombine.high %v362_v37, %v362_v37  ;;  %v382_v48 = vsel %vm63_vm0, %v363_v38, 0.0  ;;  %v384_v36 = vsel %vm63_vm0, %v362_v37, 0.0  ;;  %p717_p4 = pnand %p716_p3, %p710_p0 }
 0x187   :  { %475 = vadd.xlane.f32.xlu1 %v474_v31  ;;  %v378_v39 = vsel %vm63_vm0, %v347_v32, 0.0  ;;  %v454_v54 = vmul.f32 %v704_v53, %v452_v51  ;;  %v525_v24 = vrot.slane %v511_v16, %v767_v7  ;;  %v532_v25 = vrot.slane %v518_v20, %v767_v7 }
 0x188   :  { %v377_v35 = vadd.f32 %v376_v34, %v375_v12  ;;  %v386_v40 = vsel %vm63_vm0, %v364_v47, 0.0  ;;  %v542_v26 = vrot.slane %v512_v18, %v767_v7  ;;  %v549_v27 = vrot.slane %v535_v21, %v767_v7 }
 0x189   :  { %v456_v57 = vsel %vm455_vm1, %v452_v51, %v454_v54  ;;  %v533_v30 = vcombine.high %v525_v24, %v525_v24  ;;  %v534_v31 = vcombine.high %v532_v25, %v532_v25 }
 0x18a   :  { %v379_v42 = vadd.f32 %v378_v39, %v377_v35  ;;  %v459_v61 = vsel %vm457_vm2, %v458_v56, %v456_v57  ;;  %v550_v32 = vcombine.high %v542_v26, %v542_v26  ;;  %v551_v33 = vcombine.high %v549_v27, %v549_v27 }
 0x18c   :  { %v381_v46 = vadd.f32 %v380_v43, %v379_v42 }
 0x18e   :  { %v383_v49 = vadd.f32 %v382_v48, %v381_v46 }
 0x190   :  { %v385_v50 = vadd.f32 %v384_v36, %v383_v49 }
 0x192   :  { %v387_v41 = vadd.f32 %v386_v40, %v385_v50 }
 0x194   :  { %388 = vadd.xlane.f32.xlu0 %v387_v41 }
 0x214   :  { %v476_v52 = vpop.xlane.xlu1 %475 }
 0x215   :  { %705 = vrsqrt.f32 %v476_v52  ;;  %vm479_vm3 = vcmp.eq.f32.partialorder %v476_v52, inf  ;;  %v482_v59 = vand.u32 2147483648, %v476_v52  ;;  %vm481_vm4 = vcmp.eq.f32.partialorder %v476_v52, 0.0 }
 0x21f   :  { %v706_v55 = vpop.eup %705 }
 0x220   :  { %v478_v58 = vmul.f32 %v706_v55, %v476_v52 }
 0x221   :  { %v389_v2 = vpop.xlane.xlu0 %388 }
 0x222   :  { %v480_v60 = vsel %vm479_vm3, %v476_v52, %v478_v58 }
 0x223   :  { %v483_v62 = vsel %vm481_vm4, %v482_v59, %v480_v60 }
 0x224   :  { %v484_v63 = vmul.f32 %v483_v62, %v459_v61 }
 0x226   :  { %v485_v0 = vmax.f32 %v484_v63, 1e-08 }
 0x228   :  { %707 = vrcp.f32 %v485_v0 }
 0x232   :  { %v708_v1 = vpop.eup %707 }
 0x233   :  { %v487_v3 = vmul.f32 %v708_v1, %v389_v2 }
 0x235   :  { %v488_v5 = vsel %vm63_vm0, %v487_v3, -inf }
 0x236   :  { %v489_v8 = vrot.slane %v488_v5, 4 }
 0x238   :  { %v490_v9 = vmax.f32 %v488_v5, %v489_v8 }
 0x23a   :  { %v491_v10 = vrot.slane %v490_v9, 2 }
 0x23c   :  { %v492_v11 = vmax.f32 %v490_v9, %v491_v10 }
 0x23e   :  { %v493_v13 = vrot.slane %v492_v11, 1 }
 0x240   :  { %v494_v14 = vmax.f32 %v492_v11, %v493_v13 }
 0x242   :  { %vm497_vm5 = vcmp.ge.f32.partialorder %v487_v3, %v494_v14 }
 0x243   :  { %v498_v15 = vsel %vm497_vm5, %v764_v4, 1073741824 }
 0x244   :  { %v499_v17 = vsel %vm63_vm0, %v498_v15, 2147483647 }
 0x245   :  { %v500_v19 = vrot.slane %v499_v17, 4 }
 0x247   :  { %vm501_vm6 = vcmp.lt.s32.totalorder %v499_v17, %v500_v19 }
 0x248   :  { %v502_v22 = vsel %vm501_vm6, %v499_v17, %v500_v19 }
 0x249   :  { %v503_v23 = vrot.slane %v502_v22, 2 }
 0x24b   :  { %vm504_vm7 = vcmp.lt.s32.totalorder %v502_v22, %v503_v23 }
 0x24c   :  { %v505_v28 = vsel %vm504_vm7, %v502_v22, %v503_v23 }
 0x24d   :  { %v506_v29 = vrot.slane %v505_v28, 1 }
 0x24f   :  { %vm507_vm9 = vcmp.lt.s32.totalorder %v505_v28, %v506_v29 }
 0x250   :  { %v508_v6 = vsel %vm507_vm9, %v505_v28, %v506_v29 }
 0x251   :  { %510 = vst.msk [vmem:[#allocation2] sm:$0x1] %vm509_vm8, %v508_v6  ;;  %vm891_vm10 = vcmp.eq.s32.totalorder %v764_v4, %v508_v6 }
 0x252   :  { %v560_v34 = vsel %vm891_vm10, %v525_v24, 0.0  ;;  %v561_v35 = vsel %vm891_vm10, %v533_v30, 0.0  ;;  %v562_v37 = vsel %vm891_vm10, %v532_v25, 0.0  ;;  %v563_v38 = vsel %vm891_vm10, %v534_v31, 0.0 }
 0x253   :  { %720 = shalt.err (!%p717_p4)
}
 0x254   :  { %s721_s30 = scalar_lea.hbm %s949_s4, 16 }
 0x255   :  { %p722_p5 = scmp.ne.s32.totalorder %s949_s4, %s721_s30  ;;  %p725_p6 = scmp.lt.u32.totalorder %s721_s30, %s949_s4 }
 0x257   :  { %p727_p7 = pnand %p725_p6, %p722_p5 }
 0x259   :  { %730 = shalt.err (!%p727_p7)
}
 0x25a   :  { %687 = dma.vmem_to_hbm [thread:$0]  %s685_s26, 16, %s949_s4, [#allocation3]   ;;  %v564_v4 = vsel %vm891_vm10, %v542_v26, 0.0  ;;  %v565_v39 = vsel %vm891_vm10, %v550_v32, 0.0  ;;  %v566_v42 = vsel %vm891_vm10, %v549_v27, 0.0  ;;  %v567_v43 = vsel %vm891_vm10, %v551_v33, 0.0 }
 0x25b   :  { %v568_v46 = vsel %vm63_vm0, %v560_v34, 0.0  ;;  %v575_v47 = vsel %vm63_vm0, %v561_v35, 0.0  ;;  %v582_v48 = vsel %vm63_vm0, %v562_v37, 0.0  ;;  %v589_v49 = vsel %vm63_vm0, %v563_v38, 0.0 }
 0x25c   :  { %v569_v36 = vrot.slane %v568_v46, 4  ;;  %v576_v50 = vrot.slane %v575_v47, 4  ;;  %v583_v40 = vrot.slane %v582_v48, 4  ;;  %v590_v41 = vrot.slane %v589_v49, 4 }
 0x25d   :  { %v596_v51 = vsel %vm63_vm0, %v564_v4, 0.0  ;;  %v603_v52 = vsel %vm63_vm0, %v565_v39, 0.0  ;;  %v610_v53 = vsel %vm63_vm0, %v566_v42, 0.0  ;;  %v617_v54 = vsel %vm63_vm0, %v567_v43, 0.0 }
 0x25e   :  { %v570_v55 = vadd.f32 %v569_v36, %v568_v46  ;;  %v577_v56 = vadd.f32 %v576_v50, %v575_v47  ;;  %v584_v57 = vadd.f32 %v583_v40, %v582_v48  ;;  %v591_v58 = vadd.f32 %v590_v41, %v589_v49 }
 0x25f   :  { %v597_v59 = vrot.slane %v596_v51, 4  ;;  %v604_v60 = vrot.slane %v603_v52, 4  ;;  %v611_v61 = vrot.slane %v610_v53, 4  ;;  %v618_v62 = vrot.slane %v617_v54, 4 }
 0x260   :  { %v571_v63 = vrot.slane %v570_v55, 2  ;;  %v578_v0 = vrot.slane %v577_v56, 2  ;;  %v585_v1 = vrot.slane %v584_v57, 2  ;;  %v592_v2 = vrot.slane %v591_v58, 2 }
 0x261   :  { %v598_v3 = vadd.f32 %v597_v59, %v596_v51  ;;  %v605_v5 = vadd.f32 %v604_v60, %v603_v52  ;;  %v612_v8 = vadd.f32 %v611_v61, %v610_v53  ;;  %v619_v9 = vadd.f32 %v618_v62, %v617_v54 }
 0x262   :  { %v572_v10 = vadd.f32 %v571_v63, %v570_v55  ;;  %v579_v11 = vadd.f32 %v578_v0, %v577_v56  ;;  %v586_v13 = vadd.f32 %v585_v1, %v584_v57  ;;  %v593_v14 = vadd.f32 %v592_v2, %v591_v58 }
 0x263   :  { %v599_v15 = vrot.slane %v598_v3, 2  ;;  %v606_v16 = vrot.slane %v605_v5, 2  ;;  %v613_v17 = vrot.slane %v612_v8, 2  ;;  %v620_v18 = vrot.slane %v619_v9, 2 }
 0x264   :  { %v573_v19 = vrot.slane %v572_v10, 1  ;;  %v580_v20 = vrot.slane %v579_v11, 1  ;;  %v587_v21 = vrot.slane %v586_v13, 1  ;;  %v594_v22 = vrot.slane %v593_v14, 1 }
 0x265   :  { %v600_v23 = vadd.f32 %v599_v15, %v598_v3  ;;  %v607_v24 = vadd.f32 %v606_v16, %v605_v5  ;;  %v614_v25 = vadd.f32 %v613_v17, %v612_v8  ;;  %v621_v26 = vadd.f32 %v620_v18, %v619_v9 }
 0x266   :  { %v574_v27 = vadd.f32 %v573_v19, %v572_v10  ;;  %v581_v28 = vadd.f32 %v580_v20, %v579_v11  ;;  %v588_v29 = vadd.f32 %v587_v21, %v586_v13  ;;  %v595_v30 = vadd.f32 %v594_v22, %v593_v14 }
 0x267   :  { %v601_v31 = vrot.slane %v600_v23, 1  ;;  %v608_v32 = vrot.slane %v607_v24, 1  ;;  %v615_v33 = vrot.slane %v614_v25, 1  ;;  %v622_v6 = vrot.slane %v621_v26, 1 }
 0x268   :  { %v634_v12 = vcombine.low %v574_v27, %v581_v28  ;;  %v635_v34 = vcombine.low %v588_v29, %v595_v30 }
 0x269   :  { %v602_v35 = vadd.f32 %v601_v31, %v600_v23  ;;  %v609_v37 = vadd.f32 %v608_v32, %v607_v24  ;;  %v616_v38 = vadd.f32 %v615_v33, %v614_v25  ;;  %v623_v4 = vadd.f32 %v622_v6, %v621_v26 }
 0x26a   :  { %v642_v39 = vrot.slane %v634_v12, %v767_v7  ;;  %v649_v42 = vrot.slane %v635_v34, %v767_v7 }
 0x26b   :  { %v651_v43 = vcombine.low %v602_v35, %v609_v37  ;;  %v652_v46 = vcombine.low %v616_v38, %v623_v4 }
 0x26c   :  { %v650_v47 = vcombine.low %v642_v39, %v649_v42 }
 0x26d   :  { %v659_v48 = vrot.slane %v651_v43, %v767_v7  ;;  %v666_v49 = vrot.slane %v652_v46, %v767_v7 }
 0x26e   :  { %vm670_vm11 = vcmp.ge.f32.partialorder %v836_v44, %v650_v47 }
 0x26f   :  { %v667_v36 = vcombine.low %v659_v48, %v666_v49  ;;  %v672_v50 = vsel %vm670_vm11, %v836_v44, 0.0 }
 0x270   :  { %674 = vst [vmem:[%s948_s3] sm:$0xff] %v672_v50 }
 0x271   :  { %vm671_vm12 = vcmp.ge.f32.partialorder %v839_v45, %v667_v36 }
 0x272   :  { %v673_v40 = vsel %vm671_vm12, %v839_v45, 0.0 }
 0x273   :  { %675 = vst [vmem:[%s948_s3 + $0x8] sm:$0xff] %v673_v40 }
 0x274   :  { %731 = dma.done.wait [#allocation3], 16  }
 0x275   :  { %732 = vsyncadd [#allocation3], 4294967280 }
 0x276   :  { %693 = vsyncpa [#allocation3], 1 }

</bundles_post_ra>
